<compile_context>
chip_gen: v5e
topology: v5e:2x2
jax: 0.10.0
libtpu: 0.0.40
codegen_flags: <defaults>
</compile_context>

<pallas_src>
import jax
import jax.numpy as jnp
from jax.experimental import pallas as pl
from jax.experimental.pallas import tpu as pltpu

LANE = 128


def _round_up(x, m):
    return ((x + m - 1) // m) * m


def _vmem_budget_bytes():
    """Generation-aware scoped-VMEM limit and tile-sizing budget."""
    cap = 64 * 1024 * 1024  # conservative default (v7x per-TC physical VMEM)
    try:
        info_fn = getattr(pltpu, "get_tpu_info", None)
        if info_fn is not None:
            cap = int(getattr(info_fn(), "vmem_capacity_bytes", cap))
    except Exception:
        pass
    if cap >= 96 * 1024 * 1024:       # v5e / v6e: 128 MiB physical
        limit = 64 * 1024 * 1024
    else:                             # v7x: 64 MiB per TensorCore
        limit = 40 * 1024 * 1024
    budget = limit - 8 * 1024 * 1024  # headroom for Mosaic internal scratch
    return limit, budget


# --------------------------------------------------------------------------- #
# Kernels
# --------------------------------------------------------------------------- #
def _softmax_store(logits, o_ref):
    """Numerically stable row softmax; padded lanes carry -1e30 bias -> exp 0."""
    m = jnp.max(logits, axis=-1, keepdims=True)
    e = jnp.exp(logits - m)
    denom = jnp.sum(e, axis=-1, keepdims=True)
    o_ref[...] = (e / denom).astype(o_ref.dtype)  # exact divide; hidden under HBM-bound runtime


def classifier_kernel_single_k(x_ref, w_ref, b_ref, o_ref):
    """One batch tile, whole d_hidden in one MXU pass (no accumulator scratch)."""
    logits = jnp.dot(x_ref[...], w_ref[...],
                     preferred_element_type=jnp.float32) + b_ref[...]
    # Dropout (eval mode) = identity.
    _softmax_store(logits, o_ref)


def classifier_kernel_multi_k(x_ref, w_ref, b_ref, o_ref, acc_ref):
    """K-tiled path for large d_hidden: write-on-first (no zero-fill), then +=."""
    k = pl.program_id(1)
    part = jnp.dot(x_ref[...], w_ref[...], preferred_element_type=jnp.float32)

    @pl.when(k == 0)
    def _first():
        acc_ref[...] = part

    @pl.when(k > 0)
    def _accum():
        acc_ref[...] += part

    @pl.when(k == pl.num_programs(1) - 1)
    def _finalize():
        _softmax_store(acc_ref[...] + b_ref[...], o_ref)


# --------------------------------------------------------------------------- #
# Tiling heuristics
# --------------------------------------------------------------------------- #
def _pick_tk(d_hidden, c_pad, x_bytes, budget):
    """Keep W fully VMEM-resident (single K step) unless it would blow the budget."""
    w_db = 2 * d_hidden * c_pad * x_bytes           # W double-buffer
    if d_hidden <= LANE or w_db <= budget // 2:
        return d_hidden
    tk_cap = max(LANE, ((budget // 2) // (2 * c_pad * x_bytes)) // LANE * LANE)
    start = (min(tk_cap, d_hidden) // LANE) * LANE
    for tk in range(start, LANE - 1, -LANE):
        if d_hidden % tk == 0:                      # exact K split keeps reduction clean
            return tk
    # No clean 128-multiple divisor: keep W resident (pathological shapes only).
    return d_hidden


def _pick_tb(B, tk, c_pad, x_bytes, o_bytes, sublane, budget, multi_k):
    """Largest sublane-aligned batch tile that fits the remaining VMEM budget."""
    b_cap = _round_up(B, sublane)
    if B >= 2 * sublane:
        # At least two batch tiles so the "parallel" axis shards across v7x's
        # two TensorCores; negligible cost on single-TC v5e/v6e.
        b_cap = min(b_cap, _round_up(-(-B // 2), sublane))
    fixed = 2 * tk * c_pad * x_bytes + sublane * c_pad * 4      # W double-buf + bias
    per_row = (2 * tk * x_bytes                                  # x double-buf
               + 2 * c_pad * o_bytes                             # out double-buf
               + (c_pad * 4 if multi_k else 0))                  # f32 accumulator
    avail = max(budget - fixed, per_row * sublane)
    tb = min(b_cap, max(sublane, (avail // per_row) // sublane * sublane))
    return tb


# --------------------------------------------------------------------------- #
# Host-side glue
# --------------------------------------------------------------------------- #
def prepare_classifier_params(weight, bias, compute_dtype=None):
    """Hoisted once per model: pre-transposed, lane-padded weight + f32 bias row."""
    num_classes, d_hidden = weight.shape
    dt = compute_dtype if compute_dtype is not None else weight.dtype
    c_pad = max(LANE, _round_up(num_classes, LANE))
    w_t = jnp.zeros((d_hidden, c_pad), dtype=dt)
    w_t = w_t.at[:, :num_classes].set(weight.T.astype(dt))
    b2 = jnp.full((1, c_pad), -1e30, dtype=jnp.float32)   # pad lanes -> softmax exactly 0
    b2 = b2.at[0, :num_classes].set(bias.astype(jnp.float32))
    return w_t, b2, num_classes


def classifier_forward_prepared(x, w_t, b2, num_classes):
    """softmax(x @ W_padded + b_padded, axis=-1), eval-mode dropout (identity)."""
    B, d_hidden = x.shape
    c_pad = w_t.shape[1]
    out_dtype = x.dtype
    x_bytes = jnp.dtype(x.dtype).itemsize
    o_bytes = jnp.dtype(out_dtype).itemsize
    sublane = 16 if x.dtype == jnp.bfloat16 else 8

    limit, budget = _vmem_budget_bytes()
    tk = _pick_tk(d_hidden, c_pad, x_bytes, budget)
    n_k = pl.cdiv(d_hidden, tk)
    multi_k = n_k > 1
    tb = _pick_tb(B, tk, c_pad, x_bytes, o_bytes, sublane, budget, multi_k)

    grid = (pl.cdiv(B, tb), n_k)    # ragged batch edge: no wrapper-side jnp.pad

    in_specs = [
        pl.BlockSpec((tb, tk), lambda i, k: (i, k)),      # x tile (streamed)
        pl.BlockSpec((tk, c_pad), lambda i, k: (k, 0)),   # W tile (VMEM-resident if n_k==1)
        pl.BlockSpec((1, c_pad), lambda i, k: (0, 0)),    # bias (resident)
    ]
    out_spec = pl.BlockSpec((tb, c_pad), lambda i, k: (i, 0))

    if multi_k:
        kernel = classifier_kernel_multi_k
        scratch = [pltpu.VMEM((tb, c_pad), jnp.float32)]
    else:
        kernel = classifier_kernel_single_k
        scratch = []

    out = pl.pallas_call(
        kernel,
        out_shape=jax.ShapeDtypeStruct((B, c_pad), out_dtype),
        grid_spec=pltpu.PrefetchScalarGridSpec(
            num_scalar_prefetch=0,
            grid=grid,
            in_specs=in_specs,
            out_specs=out_spec,
            scratch_shapes=scratch,
        ),
        compiler_params=pltpu.CompilerParams(
            dimension_semantics=("parallel", "arbitrary"),
            vmem_limit_bytes=limit,
        ),
    )(x, w_t, b2)

    return out[:, :num_classes]


def make_classifier(weight, bias, compute_dtype=None):
    """Build a jitted forward fn with the weight prep hoisted out of the call path."""
    w_t, b2, num_classes = prepare_classifier_params(weight, bias, compute_dtype)

    def fwd(x):
        return classifier_forward_prepared(x, w_t, b2, num_classes)

    return jax.jit(fwd)


def classifier_forward(x, weight, bias):
    """One-off convenience wrapper (prefer make_classifier for repeated calls)."""
    w_t, b2, num_classes = prepare_classifier_params(weight, bias, x.dtype)
    return classifier_forward_prepared(x, w_t, b2, num_classes)


if __name__ == "__main__":
    key = jax.random.PRNGKey(0)
    kx, kw, kb = jax.random.split(key, 3)

    B = 8
    d_hidden = 32
    num_classes = 10

    # Deterministic synthetic parameters (same shapes as nn.Linear(d_hidden, num_classes)).
    x = jax.random.normal(kx, (B, d_hidden), dtype=jnp.float32)
    bound = 1.0 / (d_hidden ** 0.5)
    weight = jax.random.uniform(kw, (num_classes, d_hidden),
                                minval=-bound, maxval=bound, dtype=jnp.float32)
    bias = jax.random.uniform(kb, (num_classes,),
                              minval=-bound, maxval=bound, dtype=jnp.float32)

    fwd = make_classifier(weight, bias)
    out = jax.block_until_ready(fwd(x))

    # Sanity check against pure-JAX reference.
    ref = jax.nn.softmax(x @ weight.T + bias, axis=-1)
    assert out.shape == (B, num_classes), out.shape
    assert jnp.allclose(out, ref, atol=2e-3, rtol=2e-3), float(jnp.max(jnp.abs(out - ref)))
    # Exact division in the kernel -> rows sum to 1 to f32 rounding.
    assert jnp.allclose(jnp.sum(out, axis=-1), 1.0, atol=1e-4)

    print("KERNEL_OK")
</pallas_src>

<mosaic_0001>
module attributes {stable_mosaic.version = 11 : i64} {
  func.func @classifier_kernel_single_k(%arg0: i32, %arg1: i32, %arg2: memref<8x32xf32, #tpu.memory_space<vmem>>, %arg3: memref<32x128xf32, #tpu.memory_space<vmem>>, %arg4: memref<1x128xf32, #tpu.memory_space<vmem>>, %arg5: memref<8x128xf32, #tpu.memory_space<vmem>>) attributes {dimension_semantics = [#tpu.dimension_semantics<parallel>, #tpu.dimension_semantics<arbitrary>], iteration_bounds = array<i64: 1, 1>, scalar_prefetch = 0 : i64, scratch_operands = 0 : i64, tpu.core_type = #tpu.core_type<tc>, window_params = [{transform_indices = @transform_0, window_bounds = array<i64: 8, 32>}, {transform_indices = @transform_1, window_bounds = array<i64: 32, 128>}, {pipeline_mode = #tpu.pipeline_mode<synchronous>, transform_indices = @transform_2, window_bounds = array<i64: 1, 128>}, {transform_indices = @transform_3, window_bounds = array<i64: 8, 128>}]} {
    %c0 = arith.constant 0 : index
    %c0_0 = arith.constant 0 : index
    %0 = vector.load %arg2[%c0, %c0_0] : memref<8x32xf32, #tpu.memory_space<vmem>>, vector<8x32xf32>
    %c0_1 = arith.constant 0 : index
    %c0_2 = arith.constant 0 : index
    %1 = vector.load %arg3[%c0_1, %c0_2] : memref<32x128xf32, #tpu.memory_space<vmem>>, vector<32x128xf32>
    %cst = arith.constant dense<0.000000e+00> : vector<8x128xf32>
    %2 = tpu.matmul %0, %1, %cst {dimension_numbers = #tpu.dot_dimension_numbers<[1], [0], [0], [1], [0, 0, 1, 1], [], []>} : vector<8x32xf32>, vector<32x128xf32>, vector<8x128xf32> -> vector<8x128xf32>
    %c0_3 = arith.constant 0 : index
    %c0_4 = arith.constant 0 : index
    %3 = vector.load %arg4[%c0_3, %c0_4] : memref<1x128xf32, #tpu.memory_space<vmem>>, vector<1x128xf32>
    %4 = vector.broadcast %3 : vector<1x128xf32> to vector<8x128xf32>
    %5 = arith.addf %2, %4 : vector<8x128xf32>
    %cst_5 = arith.constant dense<0xFF800000> : vector<8xf32>
    %6 = vector.multi_reduction <maximumf>, %5, %cst_5 [1] : vector<8x128xf32> to vector<8xf32>
    %7 = vector.shape_cast %6 : vector<8xf32> to vector<8x1xf32>
    %8 = vector.broadcast %7 : vector<8x1xf32> to vector<8x128xf32>
    %9 = arith.subf %5, %8 : vector<8x128xf32>
    %10 = math.exp %9 : vector<8x128xf32>
    %cst_6 = arith.constant dense<0.000000e+00> : vector<8xf32>
    %11 = vector.multi_reduction <add>, %10, %cst_6 [1] : vector<8x128xf32> to vector<8xf32>
    %12 = vector.shape_cast %11 : vector<8xf32> to vector<8x1xf32>
    %13 = vector.broadcast %12 : vector<8x1xf32> to vector<8x128xf32>
    %14 = arith.divf %10, %13 : vector<8x128xf32>
    %c0_7 = arith.constant 0 : index
    %c0_8 = arith.constant 0 : index
    %15 = vector.load %arg5[%c0_7, %c0_8] : memref<8x128xf32, #tpu.memory_space<vmem>>, vector<8x128xf32>
    tpu.vector_store %arg5[%c0_7, %c0_8], %14 {strides = array<i32>} : memref<8x128xf32, #tpu.memory_space<vmem>>, vector<8x128xf32>,
    return
  }
  func.func @transform_0(%arg0: i32, %arg1: i32) -> (i32, i32) {
    %c0_i32 = arith.constant 0 : i32
    return %arg0, %arg1 : i32, i32
  }
  func.func @transform_1(%arg0: i32, %arg1: i32) -> (i32, i32) {
    %c0_i32 = arith.constant 0 : i32
    %c0_i32_0 = arith.constant 0 : i32
    return %arg1, %c0_i32 : i32, i32
  }
  func.func @transform_2(%arg0: i32, %arg1: i32) -> (i32, i32) {
    %c0_i32 = arith.constant 0 : i32
    %c0_i32_0 = arith.constant 0 : i32
    %c0_i32_1 = arith.constant 0 : i32
    return %c0_i32, %c0_i32_0 : i32, i32
  }
  func.func @transform_3(%arg0: i32, %arg1: i32) -> (i32, i32) {
    %c0_i32 = arith.constant 0 : i32
    %c0_i32_0 = arith.constant 0 : i32
    return %arg0, %c0_i32 : i32, i32
  }
}

</mosaic_0001>

<bundles_post_ra>
// kernel: fwd.1
= control target key start
LH: loop header
LB: loop body
LE: loop exit
PB: predicated region body
PF: predicated region fallthrough
CT: control target
= control target key end

     0   :  { %8 = vsyncpa [#allocation3], 0  ;;  %s245_s0 = inlined_call_operand.hbm [shape: f32[8,32], index: 0, kind: input, shape index: {}]   ;;  %s246_s1 = inlined_call_operand.hbm [shape: f32[32,128], index: 1, kind: input, shape index: {}]   ;;  %s247_s2 = inlined_call_operand.vmem [shape: f32[1,128], index: 2, kind: input, shape index: {}]   ;;  %s248_s3 = inlined_call_operand.hbm [shape: f32[8,128], index: 3, kind: output, shape index: {}]  }
   0x1   :  { %9 = vsyncpa [#allocation6], 0 }
   0x2   :  { %10 = vsyncpa [#allocation4], 0  ;;  %s16_s14 = sshll.u32 %s245_s0, 4  ;;  %s208_s15 = smov [#allocation2]   ;;  %s17_s14 = int_to_ptr.hbm [resolvable:$true] %s16_s14 }
   0x3   :  { %s18_s16 = sshll.u32 %s208_s15, 4  ;;  %s26_s19 = sshll.u32 %s246_s1, 4  ;;  %s19_s16 = int_to_ptr.vmem [resolvable:$true] %s18_s16  ;;  %s27_s19 = int_to_ptr.hbm [resolvable:$true] %s26_s19 }
   0x4   :  { %21 = dma.hbm_to_vmem [thread:$0]  %s17_s14, 128, %s19_s16, [#allocation3]  }
   0x5   :  { %s209_s20 = smov [#allocation5]   ;;  %s210_s22 = smov 128  }
   0x6   :  { %s28_s21 = sshll.u32 %s209_s20, 4  ;;  %s211_s23 = smov 8   ;;  %s29_s21 = int_to_ptr.vmem [resolvable:$true] %s28_s21 }
   0x7   :  { %34 = dma.hbm_to_vmem [thread:$0]  %s27_s19, 512, %s29_s21, [#allocation6], %s210_s22, %s210_s22, %s211_s23  }
   0x8   :  { %202 = dma.done.wait [#allocation3], 128  }
   0x9   :  { %203 = vsyncadd [#allocation3], 4294967168 }
   0xa   :  { %204 = dma.done.wait [#allocation6], 512  }
   0xb   :  { %205 = vsyncadd [#allocation6], 4294966784  ;;  %v49_v0 = vld [vmem:[#allocation5 + $0x18] sm:$0xff]  ;;  %v48_v1 = vld [vmem:[#allocation5 + $0x10] sm:$0xff]  ;;  %vm54_vm0 = vcmask 261120   ;;  %s108_s27 = sshll.u32 %s248_s3, 4  ;;  %s109_s27 = int_to_ptr.hbm [resolvable:$true] %s108_s27 }
   0xc   :  { %70 = vmatpush.msra.mxu0 %v49_v0  ;;  %v47_v2 = vld [vmem:[#allocation5 + $0x8] sm:$0xff]  ;;  %v46_v3 = vld [vmem:[#allocation5] sm:$0xff]  ;;  %v45_v4 = vld [vmem:[#allocation2] sm:$0xff] }
   0xd   :  { %v125_v5 = vld [vmem:[%s247_s2] ss:$0 sm:$0xff]  ;;  %s212_s2 = smov [#allocation7]  }
   0xe   :  { %71 = vmatpush.msra.mxu0 %v48_v1  ;;  %s106_s24 = sshll.u32 %s212_s2, 4  ;;  %s107_s24 = int_to_ptr.vmem [resolvable:$true] %s106_s24 }
  0x10   :  { %72 = vmatpush.msra.mxu0 %v47_v2 }
  0x12   :  { %73 = vmatpush.msra.mxu0 %v46_v3 }
  0x13   :  { %119 = vmatmul.msk.f32.vlgmr.msra.gmra.mxu0 %vm54_vm0, %v45_v4 }
  0x90   :  { %v75_v6 = vpop.f32.mrf.mxu0 }
  0x91   :  { %v76_v7 = vadd.f32 %v125_v5, %v75_v6 }
  0x93   :  { %78 = vmax.xlane.f32.xlu0 %v76_v7 }
 0x106   :  { %v79_v8 = vpop.xlane.xlu0 %78 }
 0x107   :  { %v80_v9 = vsub.f32 %v76_v7, %v79_v8 }
 0x109   :  { %v81_v10 = vmul.f32 1.442695, %v80_v9 }
 0x10b   :  { %126 = vpow2.f32 %v81_v10 }
 0x111   :  { %v127_v11 = vpop.eup %126 }
 0x112   :  { %83 = vadd.xlane.f32.xlu0 %v127_v11 }
 0x185   :  { %v84_v12 = vpop.xlane.xlu0 %83 }
 0x186   :  { %128 = vrcp.f32 %v84_v12  ;;  %v96_v16 = vand.u32 2147483648, %v84_v12  ;;  %v94_v18 = vand.u32 2147483647, %v84_v12  ;;  %vm90_vm2 = vweird.f32 %v84_v12 }
 0x188   :  { %v97_v20 = vor.u32 1.1754944e-38, %v96_v16  ;;  %vm95_vm4 = vcmp.eq.f32.partialorder %v94_v18, 8.507059e+37 }
 0x18c   :  { %v129_v13 = vpop.eup %128 }
 0x18d   :  { %v86_v14 = vmul.f32 %v129_v13, %v84_v12  ;;  %vm91_vm1 = vweird.f32 %v129_v13 }
 0x18e   :  { %vm92_vm3 = vmor %vm90_vm2, %vm91_vm1 }
 0x18f   :  { %v87_v15 = vsub.f32 1.0, %v86_v14 }
 0x191   :  { %v88_v17 = vmul.f32 %v129_v13, %v87_v15 }
 0x193   :  { %v89_v19 = vadd.f32 %v129_v13, %v88_v17 }
 0x195   :  { %v93_v21 = vsel %vm92_vm3, %v129_v13, %v89_v19 }
 0x196   :  { %v98_v22 = vsel %vm95_vm4, %v97_v20, %v93_v21 }
 0x197   :  { %v99_v23 = vmul.f32 %v127_v11, %v98_v22 }
 0x199   :  { %100 = vst [vmem:[#allocation7] sm:$0xff] %v99_v23 }
 0x19a   :  { %111 = dma.vmem_to_hbm [thread:$0]  %s107_s24, 128, %s109_s27, [#allocation4]  }
 0x19b   :  { %206 = dma.done.wait [#allocation4], 128  }
 0x19c   :  { %207 = vsyncadd [#allocation4], 4294967168 }
 0x19d   :  { %116 = vsyncpa [#allocation3], 1 }
 0x19e   :  { %117 = vsyncpa [#allocation6], 1 }
 0x19f   :  { %118 = vsyncpa [#allocation4], 1 }

</bundles_post_ra>
